<compile_context>
chip_gen: v6e
topology: v6e:2x2x1
jax: 0.10.0
libtpu: 0.0.40
codegen_flags: <defaults>
</compile_context>

<pallas_src>
import functools

import numpy as np
import jax
import jax.numpy as jnp
from jax import lax
from jax.experimental import pallas as pl
from jax.experimental.pallas import tpu as pltpu


# ----------------------------------------------------------------------------
# Tiny probe: determine pltpu.roll's rotation convention once (outside jit) so
# the conv tap shifts are correct regardless of the sign convention.
# ----------------------------------------------------------------------------
def _detect_roll_sign():
    def k(x_ref, o_ref):
        o_ref[...] = pltpu.roll(x_ref[...], 1, axis=1)

    x = jnp.tile(jnp.arange(128, dtype=jnp.float32), (8, 1))
    y = pl.pallas_call(k, out_shape=jax.ShapeDtypeStruct((8, 128), jnp.float32))(x)
    # np.roll(x, 1)[0, 0] == 127 ; flipped convention would give 1.
    return 1 if float(y[0, 0]) == 127.0 else -1


# ----------------------------------------------------------------------------
# Per-tap validity masks: implement zero padding of the "same" conv on the
# flattened (lane) spatial axis.
# ----------------------------------------------------------------------------
def _build_masks(h, w, ksize, pad):
    ho = np.arange(h).reshape(h, 1)
    wo = np.arange(w).reshape(1, w)
    rows = []
    for kh in range(ksize):
        for kw in range(ksize):
            dh, dw = kh - pad, kw - pad
            valid = ((ho + dh >= 0) & (ho + dh < h) &
                     (wo + dw >= 0) & (wo + dw < w))
            rows.append(valid.astype(np.float32).reshape(-1))
    return jnp.asarray(np.stack(rows, axis=0))          # (K*K, H*W) f32


# ----------------------------------------------------------------------------
# The fused whole-network kernel (one grid step == one image).
# ----------------------------------------------------------------------------
def _snrc_fused_kernel(x_ref, w_ref, scale_ref, shift_ref, mask_ref, alpha_ref,
                       o_ref, p_ref, *, width, ksize, pad, kinds, roll_sign):
    # x_ref:     (1, C, HW)     f32  channel-padded input image
    # w_ref:     (L, C, K*K*C)  bf16 packed conv weights (one slab per layer)
    # scale_ref: (L, C, 1)      f32  folded-BN scale   (unused for res convs)
    # shift_ref: (L, C, 1)      f32  folded-BN shift
    # mask_ref:  (K*K, HW)      f32  per-tap validity mask (zero padding)
    # alpha_ref: (1,)           f32  PReLU slope (SMEM scalar)
    # o_ref:     (1, out_c, HW) f32  network output
    # p_ref:     (K*K*C, HW)    bf16 VMEM scratch: im2col matrix, reused
    C, HW = x_ref.shape[1], x_ref.shape[2]

    masks = mask_ref[...]                 # hoisted once for the whole network
    alpha = alpha_ref[0]

    def conv(a, l):
        # Build P: row block tap*C:(tap+1)*C holds the activation shifted by
        # (dh, dw) with out-of-image pixels zeroed, cast to bf16 for the MXU.
        for kh in range(ksize):
            for kw in range(ksize):
                tap = kh * ksize + kw
                d = (kh - pad) * width + (kw - pad)      # flat spatial offset
                if d == 0:
                    patch = a
                else:
                    patch = pltpu.roll(a, (-d * roll_sign) % HW, axis=1)
                    patch = patch * masks[tap]
                p_ref[tap * C:(tap + 1) * C, :] = patch.astype(p_ref.dtype)
        # One MXU matmul per conv: M=C, K=K*K*C, N=HW (lane-dense output).
        return lax.dot_general(
            w_ref[l], p_ref[...],
            dimension_numbers=(((1,), (0,)), ((), ())),
            preferred_element_type=jnp.float32)          # (C, HW) f32

    x = x_ref[0]                                         # (C, HW) f32
    residual = None
    for l, kind in enumerate(kinds):                     # fully unrolled
        y = conv(x, l)
        if kind == "prelu_bn":                           # proin
            y = y * scale_ref[l] + shift_ref[l]
            y = jnp.where(y >= 0, y, alpha * y)
        elif kind == "relu_bn":                          # Conv_BN_ACT (ReLU)
            y = y * scale_ref[l] + shift_ref[l]
            y = jnp.maximum(y, 0.0)
        elif kind == "res_in":                           # ResBlock conv1
            residual = x
            y = jnp.maximum(y, 0.0)
        else:                                            # "res_out": conv2+skip
            y = jnp.maximum(y + residual, 0.0)
        x = y
    o_ref[...] = x[:o_ref.shape[1], :][None]


# ----------------------------------------------------------------------------
# Parameter packing for the fused kernel.
# ----------------------------------------------------------------------------
def _pack_params(params):
    hc = params["proin"]["w"].shape[-1]

    def pack_w(w):
        kh, kw, cin, cout = w.shape
        w = jnp.pad(w, ((0, 0), (0, 0), (0, hc - cin), (0, hc - cout)))
        # (hc, K*K*hc): row = cout, col = (kh*KW + kw)*hc + cin
        return w.reshape(kh * kw * hc, hc).T.astype(jnp.bfloat16)

    def pack_affine(scale, shift):
        c = scale.shape[1]
        s = jnp.concatenate([scale[0], jnp.ones((hc - c,), jnp.float32)])
        b = jnp.concatenate([shift[0], jnp.zeros((hc - c,), jnp.float32)])
        return s[:, None], b[:, None]                    # (hc, 1) each

    ws, ss, bs, kinds = [], [], [], []

    def add(w, scale=None, shift=None, kind="relu_bn"):
        ws.append(pack_w(w))
        if scale is None:
            s = jnp.ones((hc, 1), jnp.float32)
            b = jnp.zeros((hc, 1), jnp.float32)
        else:
            s, b = pack_affine(scale, shift)
        ss.append(s)
        bs.append(b)
        kinds.append(kind)

    p = params["proin"]
    add(p["w"], p["scale"], p["shift"], "prelu_bn")
    for c, r in zip(params["convs"], params["rescons"]):
        add(c["w"], c["scale"], c["shift"], "relu_bn")
        add(r["w1"], kind="res_in")
        add(r["w2"], kind="res_out")
    p1 = params["prout1"]
    add(p1["w"], p1["scale"], p1["shift"], "relu_bn")
    p2 = params["prout2"]
    add(p2["w"], p2["scale"], p2["shift"], "relu_bn")

    return jnp.stack(ws), jnp.stack(ss), jnp.stack(bs), tuple(kinds)


# ----------------------------------------------------------------------------
# Pallas forward (single fused pallas_call) and pure-JAX reference.
# ----------------------------------------------------------------------------
def snrc_forward(params, x_nchw, *, hide_layers, padding, roll_sign=1):
    n, cin, h, w = x_nchw.shape
    ksize = params["proin"]["w"].shape[0]
    hc = params["proin"]["w"].shape[-1]
    out_c = params["prout2"]["w"].shape[-1]
    hw = h * w
    kk = ksize * ksize

    assert padding == (ksize - 1) // 2, "only 'same' convs are supported"
    assert cin <= hc and out_c <= hc and hc % 8 == 0
    assert len(params["convs"]) == 2 * hide_layers

    wp, sp, bp, kinds = _pack_params(params)
    nl = len(kinds)
    masks = _build_masks(h, w, ksize, padding)
    alpha = params["prelu_alpha"].reshape(1).astype(jnp.float32)

    # Channel-pad the NCHW input once to (N, hc, H*W); padded channels are zero
    # and their packed weights are zero too.
    x = x_nchw.reshape(n, cin, hw).astype(jnp.float32)
    x = jnp.pad(x, ((0, 0), (0, hc - cin), (0, 0)))

    kernel = functools.partial(
        _snrc_fused_kernel, width=w, ksize=ksize, pad=padding,
        kinds=kinds, roll_sign=roll_sign)

    out = pl.pallas_call(
        kernel,
        out_shape=jax.ShapeDtypeStruct((n, out_c, hw), jnp.float32),
        grid=(n,),
        in_specs=[
            pl.BlockSpec((1, hc, hw), lambda i: (i, 0, 0)),        # image
            pl.BlockSpec((nl, hc, kk * hc), lambda i: (0, 0, 0)),  # weights
            pl.BlockSpec((nl, hc, 1), lambda i: (0, 0, 0)),        # BN scale
            pl.BlockSpec((nl, hc, 1), lambda i: (0, 0, 0)),        # BN shift
            pl.BlockSpec((kk, hw), lambda i: (0, 0)),              # tap masks
            pl.BlockSpec(memory_space=pltpu.MemorySpace.SMEM),     # PReLU alpha
        ],
        out_specs=pl.BlockSpec((1, out_c, hw), lambda i: (i, 0, 0)),
        scratch_shapes=[pltpu.VMEM((kk * hc, hw), jnp.bfloat16)],  # im2col P
        compiler_params=pltpu.CompilerParams(
            dimension_semantics=("parallel",)),   # batch axis -> 2 TCs on v7x
    )(x, wp, sp, bp, masks, alpha)

    return out.reshape(n, out_c, h, w)


def _ref_conv(x, w, padding):
    # bf16 operands + f32 accumulation: mirrors what the kernel feeds the MXU.
    return lax.conv_general_dilated(
        x.astype(jnp.bfloat16), w.astype(jnp.bfloat16),
        window_strides=(1, 1), padding=[(padding, padding)] * 2,
        dimension_numbers=("NHWC", "HWIO", "NHWC"),
        preferred_element_type=jnp.float32)


def snrc_forward_ref(params, x_nchw, *, hide_layers, padding):
    x = jnp.transpose(x_nchw, (0, 2, 3, 1))
    alpha = params["prelu_alpha"][0]

    def cba(x, p, a):
        y = _ref_conv(x, p["w"], padding) * p["scale"][0] + p["shift"][0]
        return jnp.where(y >= 0, y, a * y)

    x = cba(x, params["proin"], alpha)
    for i in range(2 * hide_layers):
        x = cba(x, params["convs"][i], 0.0)
        r = params["rescons"][i]
        h = jnp.maximum(_ref_conv(x, r["w1"], padding), 0.0)
        x = jnp.maximum(_ref_conv(h, r["w2"], padding) + x, 0.0)
    x = cba(x, params["prout1"], 0.0)
    x = cba(x, params["prout2"], 0.0)
    return jnp.transpose(x, (0, 3, 1, 2))


# ----------------------------------------------------------------------------
# Deterministic synthetic parameters.
# ----------------------------------------------------------------------------
def _conv_weight(key, cin, cout, k):
    return jax.random.normal(key, (k, k, cin, cout), jnp.float32) / jnp.sqrt(k * k * cin)


def _bn_fold(key, c, eps=1e-5):
    kg, kb, km, kv = jax.random.split(key, 4)
    gamma = 1.0 + 0.1 * jax.random.normal(kg, (c,), jnp.float32)
    beta = 0.05 * jax.random.normal(kb, (c,), jnp.float32)
    mean = 0.05 * jax.random.normal(km, (c,), jnp.float32)
    var = 1.0 + 0.1 * jax.random.uniform(kv, (c,), jnp.float32)
    scale = gamma / jnp.sqrt(var + eps)
    shift = beta - mean * scale
    return scale[None, :], shift[None, :]


def make_snrc_params(key, in_channels, hide_channels, out_channels, kernel_size, hide_layers):
    params = {}
    n_keys = 8 * hide_layers + 14
    keys = jax.random.split(key, n_keys)
    it = iter(range(n_keys))

    def cba(cin, cout):
        w = _conv_weight(keys[next(it)], cin, cout, kernel_size)
        s, b = _bn_fold(keys[next(it)], cout)
        return {"w": w, "scale": s, "shift": b}

    params["proin"] = cba(in_channels, hide_channels)
    params["convs"] = [cba(hide_channels, hide_channels) for _ in range(2 * hide_layers)]
    params["rescons"] = [
        {"w1": _conv_weight(keys[next(it)], hide_channels, hide_channels, kernel_size),
         "w2": _conv_weight(keys[next(it)], hide_channels, hide_channels, kernel_size)}
        for _ in range(2 * hide_layers)
    ]
    params["prout1"] = cba(hide_channels, hide_channels)
    params["prout2"] = cba(hide_channels, out_channels)
    params["prelu_alpha"] = jnp.full((1,), 0.25, jnp.float32)   # nn.PReLU() default
    return params


# ----------------------------------------------------------------------------
if __name__ == "__main__":
    N, IN_C, HIDE_C, OUT_C = 2, 3, 32, 1
    H = W = 16
    K, PAD, HIDE_LAYERS = 3, 1, 2

    key = jax.random.PRNGKey(0)
    kx, kp = jax.random.split(key)
    x = jax.random.normal(kx, (N, IN_C, H, W), jnp.float32)     # NCHW like PyTorch
    params = make_snrc_params(kp, IN_C, HIDE_C, OUT_C, K, HIDE_LAYERS)

    roll_sign = _detect_roll_sign()

    fwd = jax.jit(functools.partial(
        snrc_forward, hide_layers=HIDE_LAYERS, padding=PAD, roll_sign=roll_sign))
    out = jax.block_until_ready(fwd(params, x))
    assert out.shape == (N, OUT_C, H, W), out.shape

    ref = snrc_forward_ref(params, x, hide_layers=HIDE_LAYERS, padding=PAD)
    err = float(jnp.max(jnp.abs(out - ref)))
    assert jnp.allclose(out, ref, rtol=2e-3, atol=2e-3), err

    print("KERNEL_OK")
</pallas_src>

<mosaic_0001>
module attributes {stable_mosaic.version = 11 : i64} {
  func.func @k(%arg0: memref<8x128xf32, #tpu.memory_space<vmem>>, %arg1: memref<8x128xf32, #tpu.memory_space<vmem>>) attributes {dimension_semantics = [], scalar_prefetch = 0 : i64, scratch_operands = 0 : i64, tpu.core_type = #tpu.core_type<tc>} {
    %c0 = arith.constant 0 : index
    %c0_0 = arith.constant 0 : index
    %0 = vector.load %arg0[%c0, %c0_0] : memref<8x128xf32, #tpu.memory_space<vmem>>, vector<8x128xf32>
    %c1_i32 = arith.constant 1 : i32
    %1 = tpu.dynamic_rotate %0 by %c1_i32 dim 1 : vector<8x128xf32>, i32 -> vector<8x128xf32>
    %c0_1 = arith.constant 0 : index
    %c0_2 = arith.constant 0 : index
    %2 = vector.load %arg1[%c0_1, %c0_2] : memref<8x128xf32, #tpu.memory_space<vmem>>, vector<8x128xf32>
    tpu.vector_store %arg1[%c0_1, %c0_2], %1 {strides = array<i32>} : memref<8x128xf32, #tpu.memory_space<vmem>>, vector<8x128xf32>,
    return
  }
}

</mosaic_0001>

<bundles_post_ra>
// kernel: tpu_custom_call.1
= control target key start
LH: loop header
LB: loop body
LE: loop exit
PB: predicated region body
PF: predicated region fallthrough
CT: control target
= control target key end

     0   :  { %6 = vsyncpa [#allocation3], 0  ;;  %s106_s0 = inlined_call_operand.hbm [shape: f32[8,128], index: 0, kind: input, shape index: {}]   ;;  %s107_s1 = inlined_call_operand.hbm [shape: f32[8,128], index: 1, kind: output, shape index: {}]  }
   0x1   :  { %7 = vsyncpa [#allocation4], 0  ;;  %s87_s6 = smov [#allocation2]  }
   0x2   :  { %s14_s7 = sshll.u32 %s87_s6, 4  ;;  %s15_s7 = int_to_ptr.vmem [resolvable:$true] %s14_s7 }
   0x3   :  { %s51_s8 = scalar_lea.vmem %s15_s7, 128  ;;  %p56_p1 = scmp.lt.s32.totalorder %s15_s7, %s15_s7 }
   0x4   :  { %p52_p0 = scmp.ne.s32.totalorder %s15_s7, %s51_s8  ;;  %p57_p2 = scmp.lt.s32.totalorder %s51_s8, %s51_s8 }
   0x6   :  { %p58_p3 = por %p57_p2, %p56_p1 }
   0x8   :  { %p59_p4 = pnand %p58_p3, %p52_p0 }
   0xa   :  { %62 = shalt.err (!%p59_p4)
}
   0xb   :  { %17 = dma.hbm_to_vmem [thread:$0]  %s106_s0, 128, %s15_s7, [#allocation3]  }
   0xc   :  { %83 = dma.done.wait [#allocation3], 128  }
   0xd   :  { %84 = vsyncadd [#allocation3], 4294967168  ;;  %v21_v0 = vld [vmem:[#allocation2] sm:$0xff]  ;;  %s88_s11 = smov 1   ;;  %s89_s12 = smov [#allocation5]  }
   0xe   :  { %22 = vrot.lane.b32.xlu0 %v21_v0, %s88_s11  ;;  %s31_s13 = sshll.u32 %s89_s12, 4  ;;  %s32_s13 = int_to_ptr.vmem [resolvable:$true] %s31_s13 }
   0xf   :  { %s63_s14 = scalar_lea.vmem %s32_s13, 128  ;;  %p68_p6 = scmp.lt.s32.totalorder %s32_s13, %s32_s13 }
  0x10   :  { %p64_p5 = scmp.ne.s32.totalorder %s32_s13, %s63_s14  ;;  %p69_p7 = scmp.lt.s32.totalorder %s63_s14, %s63_s14 }
  0x12   :  { %p70_p8 = por %p69_p7, %p68_p6 }
  0x14   :  { %p71_p9 = pnand %p70_p8, %p64_p5 }
  0x80   :  { %v23_v1 = vpop.permute.xlu0 %22 }
  0x81   :  { %24 = vst [vmem:[#allocation5] sm:$0xff] %v23_v1 }
  0x82   :  { %74 = shalt.err (!%p71_p9)
}
  0x83   :  { %34 = dma.vmem_to_hbm [thread:$0]  %s32_s13, 128, %s107_s1, [#allocation4]  }
  0x84   :  { %85 = dma.done.wait [#allocation4], 128  }
  0x85   :  { %86 = vsyncadd [#allocation4], 4294967168 }
  0x86   :  { %38 = vsyncpa [#allocation3], 1 }
  0x87   :  { %39 = vsyncpa [#allocation4], 1 }

</bundles_post_ra>
